<compile_context>
chip_gen: v6e
topology: v6e:2x2x1
jax: 0.10.0
libtpu: 0.0.40
codegen_flags: <defaults>
</compile_context>

<pallas_src>
import math

import jax
import jax.numpy as jnp
from jax.experimental import pallas as pl
from jax.experimental.pallas import tpu as pltpu

EMBED_DIM = 32
NUM_HEADS = 4
HEAD_DIM = EMBED_DIM // NUM_HEADS
OUT_DIM = 512
BATCH = 8


def _hdot(a, b):
    # Host / reference matmuls in full f32 precision.
    return jnp.dot(a, b, precision=jax.lax.Precision.HIGHEST)


def _round_up(n, m):
    return ((n + m - 1) // m) * m


def _fused_affine_kernel(x_ref, w_ref, b_ref, out_ref):
    # One MXU pass per tile: (tm, E) @ (E, tn) accumulated in f32, plus a lane-dense bias add.
    # x is cast to the weight dtype so a bf16 weight slab gives a bf16xbf16->f32 MXU pass.
    out_ref[...] = (
        jnp.dot(x_ref[...].astype(w_ref.dtype), w_ref[...],
                preferred_element_type=jnp.float32)
        + b_ref[...]
    ).astype(out_ref.dtype)


def fold_params(params):
    """Fold value-proj -> out-proj -> fc into one (E, 512) weight slab and one (1, 512) bias.

    seq_len == 1 => softmax over the single key is 1, so wq/wk/bq/bk never influence the output.
    """
    (wq_t, wk_t, wv_t, bq, bk, bv, wo_t, bo, wf_t, bf) = params
    del wq_t, wk_t, bq, bk                               # mathematically inert for seq_len == 1
    w_fused = _hdot(_hdot(wv_t, wo_t), wf_t)             # (E, OUT_DIM)
    b_fused = _hdot(_hdot(bv, wo_t) + bo, wf_t) + bf     # (1, OUT_DIM)
    return w_fused, b_fused


def make_self_attention_fusion(params, *, block_m=512, block_n=256,
                               weight_dtype=jnp.float32):
    """Fold the parameters once and return a jitted forward: x (B, 32) -> (B, 512)."""
    w_fused, b_fused = fold_params(params)
    w_fused = jnp.asarray(w_fused, weight_dtype)      # bf16 option for v6e/v7x MXU feed
    b_fused = jnp.asarray(b_fused, jnp.float32)       # bias add stays f32 (v5e VPU has no bf16)

    assert OUT_DIM % block_n == 0 and block_n % 128 == 0
    assert block_m % 8 == 0

    whole_vmem = pl.BlockSpec(memory_space=pltpu.MemorySpace.VMEM)

    @jax.jit
    def forward(x):
        b, e = x.shape
        assert e == EMBED_DIM

        if b <= block_m:
            # Gridless single invocation: everything (x, W, bias, out) lives in VMEM at once.
            # Removes pipeline prologue/epilogue and per-grid-step overhead, which dominate at
            # small batch.  (At this size the op is launch-bound, so no megacore split either.)
            return pl.pallas_call(
                _fused_affine_kernel,
                out_shape=jax.ShapeDtypeStruct((b, OUT_DIM), jnp.float32),
                in_specs=[whole_vmem, whole_vmem, whole_vmem],
                out_specs=whole_vmem,
            )(x, w_fused, b_fused)

        # Large-batch path: tile the batch (cdiv grid, Pallas masks the ragged tail block -- no
        # host-side pad/slice) and split OUT_DIM into 256-lane halves so both v7x TensorCores
        # get work even when the batch fits one tile.  Weight/bias halves are revisited per
        # batch tile; x is re-used across the inner lane axis.
        tm, tn = block_m, block_n
        grid = (pl.cdiv(b, tm), OUT_DIM // tn)
        return pl.pallas_call(
            _fused_affine_kernel,
            out_shape=jax.ShapeDtypeStruct((b, OUT_DIM), jnp.float32),
            grid=grid,
            in_specs=[
                pl.BlockSpec((tm, EMBED_DIM), lambda i, j: (i, 0)),   # x batch tile
                pl.BlockSpec((EMBED_DIM, tn), lambda i, j: (0, j)),   # fused-weight lane half
                pl.BlockSpec((1, tn), lambda i, j: (0, j)),           # fused-bias lane half
            ],
            out_specs=pl.BlockSpec((tm, tn), lambda i, j: (i, j)),
            compiler_params=pltpu.CompilerParams(
                dimension_semantics=("parallel", "parallel")),
        )(x, w_fused, b_fused)

    return forward


def make_params(key):
    """Same parameterization as the PyTorch module (q/k kept for fidelity, unused at run time)."""
    ks = jax.random.split(key, 10)
    s_e = 1.0 / math.sqrt(EMBED_DIM)
    wq_t = jax.random.uniform(ks[0], (EMBED_DIM, EMBED_DIM), jnp.float32, -s_e, s_e)
    wk_t = jax.random.uniform(ks[1], (EMBED_DIM, EMBED_DIM), jnp.float32, -s_e, s_e)
    wv_t = jax.random.uniform(ks[2], (EMBED_DIM, EMBED_DIM), jnp.float32, -s_e, s_e)
    bq = jax.random.uniform(ks[3], (1, EMBED_DIM), jnp.float32, -s_e, s_e)
    bk = jax.random.uniform(ks[4], (1, EMBED_DIM), jnp.float32, -s_e, s_e)
    bv = jax.random.uniform(ks[5], (1, EMBED_DIM), jnp.float32, -s_e, s_e)
    wo_t = jax.random.uniform(ks[6], (EMBED_DIM, EMBED_DIM), jnp.float32, -s_e, s_e)
    bo = jax.random.uniform(ks[7], (1, EMBED_DIM), jnp.float32, -s_e, s_e)
    wf_t = jax.random.uniform(ks[8], (EMBED_DIM, OUT_DIM), jnp.float32, -s_e, s_e)
    bf = jax.random.uniform(ks[9], (1, OUT_DIM), jnp.float32, -s_e, s_e)
    return (wq_t, wk_t, wv_t, bq, bk, bv, wo_t, bo, wf_t, bf)


def reference(x, params):
    """Pure-JAX mirror of the full PyTorch forward (q/k/softmax included) for verification."""
    (wq_t, wk_t, wv_t, bq, bk, bv, wo_t, bo, wf_t, bf) = params
    b = x.shape[0]
    q = _hdot(x, wq_t) + bq
    k = _hdot(x, wk_t) + bk
    v = _hdot(x, wv_t) + bv
    qh = q.reshape(b, NUM_HEADS, HEAD_DIM)
    kh = k.reshape(b, NUM_HEADS, HEAD_DIM)
    vh = v.reshape(b, NUM_HEADS, HEAD_DIM)
    # seq_len == 1: each element attends to its single key; softmax over one key -> 1.
    s = jnp.sum(qh * kh, axis=-1, keepdims=True) / math.sqrt(HEAD_DIM)   # (b, H, 1)
    w = jax.nn.softmax(s, axis=-1)                                       # all ones
    attn = (w * vh).reshape(b, EMBED_DIM)
    h = _hdot(attn, wo_t) + bo
    return _hdot(h, wf_t) + bf


if __name__ == "__main__":
    key = jax.random.PRNGKey(0)
    k_x, k_p, k_x2 = jax.random.split(key, 3)
    params = make_params(k_p)

    # Fold once, reuse across calls (feedback item 1: no per-call fold / pad / slice).
    forward = make_self_attention_fusion(params)

    # Small batch (the module's actual use case): gridless path.
    x = jax.random.normal(k_x, (BATCH, EMBED_DIM), jnp.float32)
    out = jax.block_until_ready(forward(x))
    ref = reference(x, params)
    assert out.shape == (BATCH, OUT_DIM)
    assert jnp.allclose(out, ref, atol=1e-4, rtol=1e-4), "mismatch vs reference (small batch)"

    # Larger batch: exercises the tiled (batch x lane-half) grid path.
    x2 = jax.random.normal(k_x2, (1024, EMBED_DIM), jnp.float32)
    out2 = jax.block_until_ready(forward(x2))
    ref2 = reference(x2, params)
    assert out2.shape == (1024, OUT_DIM)
    assert jnp.allclose(out2, ref2, atol=1e-4, rtol=1e-4), "mismatch vs reference (large batch)"

    print("KERNEL_OK")
</pallas_src>

<mosaic_0001>
module attributes {stable_mosaic.version = 11 : i64} {
  func.func @_fused_affine_kernel(%arg0: memref<8x32xf32, #tpu.memory_space<vmem>>, %arg1: memref<32x512xf32, #tpu.memory_space<vmem>>, %arg2: memref<1x512xf32, #tpu.memory_space<vmem>>, %arg3: memref<8x512xf32, #tpu.memory_space<vmem>>) attributes {dimension_semantics = [], scalar_prefetch = 0 : i64, scratch_operands = 0 : i64, tpu.core_type = #tpu.core_type<tc>} {
    %c0 = arith.constant 0 : index
    %c0_0 = arith.constant 0 : index
    %0 = vector.load %arg0[%c0, %c0_0] : memref<8x32xf32, #tpu.memory_space<vmem>>, vector<8x32xf32>
    %c0_1 = arith.constant 0 : index
    %c0_2 = arith.constant 0 : index
    %1 = vector.load %arg1[%c0_1, %c0_2] : memref<32x512xf32, #tpu.memory_space<vmem>>, vector<32x512xf32>
    %cst = arith.constant dense<0.000000e+00> : vector<8x512xf32>
    %2 = tpu.matmul %0, %1, %cst {dimension_numbers = #tpu.dot_dimension_numbers<[1], [0], [0], [1], [0, 0, 1, 1], [], []>} : vector<8x32xf32>, vector<32x512xf32>, vector<8x512xf32> -> vector<8x512xf32>
    %c0_3 = arith.constant 0 : index
    %c0_4 = arith.constant 0 : index
    %3 = vector.load %arg2[%c0_3, %c0_4] : memref<1x512xf32, #tpu.memory_space<vmem>>, vector<1x512xf32>
    %4 = vector.broadcast %3 : vector<1x512xf32> to vector<8x512xf32>
    %5 = arith.addf %2, %4 : vector<8x512xf32>
    %c0_5 = arith.constant 0 : index
    %c0_6 = arith.constant 0 : index
    %6 = vector.load %arg3[%c0_5, %c0_6] : memref<8x512xf32, #tpu.memory_space<vmem>>, vector<8x512xf32>
    tpu.vector_store %arg3[%c0_5, %c0_6], %5 {strides = array<i32>} : memref<8x512xf32, #tpu.memory_space<vmem>>, vector<8x512xf32>,
    return
  }
}

</mosaic_0001>

<bundles_post_ra>
// kernel: forward.1
= control target key start
LH: loop header
LB: loop body
LE: loop exit
PB: predicated region body
PF: predicated region fallthrough
CT: control target
= control target key end

     0   :  { %8 = vsyncpa [#allocation3], 0  ;;  %s391_s0 = inlined_call_operand.hbm [shape: f32[8,32], index: 0, kind: input, shape index: {}]   ;;  %s392_s1 = inlined_call_operand.hbm [shape: f32[32,512], index: 1, kind: input, shape index: {}]   ;;  %s393_s2 = inlined_call_operand.hbm [shape: f32[1,512], index: 2, kind: input, shape index: {}]   ;;  %s394_s3 = inlined_call_operand.hbm [shape: f32[8,512], index: 3, kind: output, shape index: {}]  }
   0x1   :  { %9 = vsyncpa [#allocation6], 0 }
   0x2   :  { %10 = vsyncpa [#allocation4], 0  ;;  %s352_s12 = smov [#allocation5]  }
   0x3   :  { %s26_s13 = sshll.u32 %s352_s12, 4  ;;  %s27_s13 = int_to_ptr.vmem [resolvable:$true] %s26_s13 }
   0x4   :  { %s274_s14 = scalar_lea.vmem %s27_s13, 2048  ;;  %p279_p1 = scmp.lt.s32.totalorder %s27_s13, %s27_s13 }
   0x5   :  { %p275_p0 = scmp.ne.s32.totalorder %s27_s13, %s274_s14  ;;  %p280_p2 = scmp.lt.s32.totalorder %s274_s14, %s274_s14 }
   0x7   :  { %p281_p3 = por %p280_p2, %p279_p1 }
   0x9   :  { %p282_p4 = pnand %p281_p3, %p275_p0 }
   0xb   :  { %285 = shalt.err (!%p282_p4)
}
   0xc   :  { %s353_s15 = smov 512   ;;  %s354_s16 = smov 32  }
   0xd   :  { %32 = dma.hbm_to_vmem [thread:$0]  %s392_s1, 2048, %s27_s13, [#allocation6], %s353_s15, %s353_s15, %s354_s16  }
   0xe   :  { %s355_s19 = smov [#allocation2]   ;;  %s356_s21 = smov [#allocation7]  }
   0xf   :  { %s17_s20 = sshll.u32 %s355_s19, 4  ;;  %s39_s22 = sshll.u32 %s356_s21, 4  ;;  %s18_s20 = int_to_ptr.vmem [resolvable:$true] %s17_s20  ;;  %s40_s22 = int_to_ptr.vmem [resolvable:$true] %s39_s22 }
  0x10   :  { %s294_s23 = scalar_lea.vmem %s18_s20, 128  ;;  %p299_p6 = scmp.lt.s32.totalorder %s18_s20, %s18_s20 }
  0x11   :  { %p295_p5 = scmp.ne.s32.totalorder %s18_s20, %s294_s23  ;;  %p300_p7 = scmp.lt.s32.totalorder %s294_s23, %s294_s23 }
  0x13   :  { %p301_p8 = por %p300_p7, %p299_p6 }
  0x15   :  { %p302_p9 = pnand %p301_p8, %p295_p5 }
  0x17   :  { %305 = shalt.err (!%p302_p9)
}
  0x18   :  { %20 = dma.hbm_to_vmem [thread:$0]  %s391_s0, 128, %s18_s20, [#allocation3]  }
  0x19   :  { %s314_s26 = scalar_lea.vmem %s40_s22, 64  ;;  %p319_p11 = scmp.lt.s32.totalorder %s40_s22, %s40_s22 }
  0x1a   :  { %p315_p10 = scmp.ne.s32.totalorder %s40_s22, %s314_s26  ;;  %p320_p12 = scmp.lt.s32.totalorder %s314_s26, %s314_s26 }
  0x1c   :  { %p321_p13 = por %p320_p12, %p319_p11 }
  0x1e   :  { %p322_p0 = pnand %p321_p13, %p315_p10 }
  0x20   :  { %325 = shalt.err (!%p322_p0)
}
  0x21   :  { %42 = dma.hbm_to_vmem [thread:$0]  %s393_s2, 64, %s40_s22, [#allocation6]  }
  0x22   :  { %346 = dma.done.wait [#allocation3], 128  }
  0x23   :  { %347 = vsyncadd [#allocation3], 4294967168 }
  0x24   :  { %348 = dma.done.wait [#allocation6], 2112  }
  0x25   :  { %349 = vsyncadd [#allocation6], 4294965184  ;;  %v357_v0 = vmov 0.0   ;;  %v66_v1 = vld [vmem:[#allocation5 + $0x68] sm:$0xff]  ;;  %v68_v2 = vld [vmem:[#allocation5 + $0x78] sm:$0xff]  ;;  %vm91_vm0 = vcmask 261120   ;;  %v71_v18 = vlaneseq }
  0x26   :  { %159 = vmatprep.mubr.f32.mxu0 %v357_v0  ;;  %230 = vmatprep.mubr.f32.mxu1 %v357_v0  ;;  %v65_v3 = vld [vmem:[#allocation5 + $0x60] sm:$0xff]  ;;  %v67_v4 = vld [vmem:[#allocation5 + $0x70] sm:$0xff]  ;;  %v62_v5 = vld [vmem:[#allocation5 + $0x48] sm:$0xff]  ;;  %s358_s0 = smov [#allocation8]  }
  0x27   :  { %119 = vmatprep.subr.mxu0 %v66_v1  ;;  %190 = vmatprep.subr.mxu1 %v68_v2  ;;  %v64_v6 = vld [vmem:[#allocation5 + $0x58] sm:$0xff]  ;;  %v61_v7 = vld [vmem:[#allocation5 + $0x40] sm:$0xff]  ;;  %v63_v8 = vld [vmem:[#allocation5 + $0x50] sm:$0xff]  ;;  %v72_v19 = vshrl.u32 %v71_v18, 7  ;;  %s247_s2 = sshll.u32 %s358_s0, 4  ;;  %s248_s2 = int_to_ptr.vmem [resolvable:$true] %s247_s2 }
  0x28   :  { %120 = vmatpush1.msra.mxu0 %v65_v3  ;;  %191 = vmatpush1.msra.mxu1 %v67_v4  ;;  %v58_v9 = vld [vmem:[#allocation5 + $0x28] sm:$0xff]  ;;  %v60_v10 = vld [vmem:[#allocation5 + $0x38] sm:$0xff]  ;;  %v57_v11 = vld [vmem:[#allocation5 + $0x20] sm:$0xff]  ;;  %s326_s28 = scalar_lea.vmem %s248_s2, 512  ;;  %p331_p2 = scmp.lt.s32.totalorder %s248_s2, %s248_s2 }
  0x29   :  { %121 = vmatprep.subr.mxu0 %v62_v5  ;;  %192 = vmatprep.subr.mxu1 %v64_v6  ;;  %v59_v12 = vld [vmem:[#allocation5 + $0x30] sm:$0xff]  ;;  %v54_v13 = vld [vmem:[#allocation5 + $0x8] sm:$0xff]  ;;  %v56_v14 = vld [vmem:[#allocation5 + $0x18] sm:$0xff]  ;;  %v73_v20 = vsub.s32 0, %v72_v19  ;;  %v81_v21 = vsub.s32 2, %v72_v19  ;;  %v77_v23 = vsub.s32 1, %v72_v19  ;;  %p327_p1 = scmp.ne.s32.totalorder %s248_s2, %s326_s28  ;;  %p332_p3 = scmp.lt.s32.totalorder %s326_s28, %s326_s28 }
  0x2a   :  { %122 = vmatpush1.msra.mxu0 %v61_v7  ;;  %193 = vmatpush1.msra.mxu1 %v63_v8  ;;  %v53_v15 = vld [vmem:[#allocation5] sm:$0xff]  ;;  %v55_v16 = vld [vmem:[#allocation5 + $0x10] sm:$0xff]  ;;  %v52_v17 = vld [vmem:[#allocation2] sm:$0xff]  ;;  %v85_v24 = vsub.s32 3, %v72_v19 }
  0x2b   :  { %123 = vmatprep.subr.mxu0 %v58_v9  ;;  %194 = vmatprep.subr.mxu1 %v60_v10  ;;  %v69_v22 = vld [vmem:[#allocation7] sm:$0xf]  ;;  %p333_p4 = por %p332_p3, %p331_p2 }
  0x2c   :  { %124 = vmatpush1.msra.mxu0 %v57_v11  ;;  %195 = vmatpush1.msra.mxu1 %v59_v12  ;;  %v74_v25 = vrot.slane %v69_v22, %v73_v20  ;;  %v82_v26 = vrot.slane %v69_v22, %v81_v21  ;;  %v78_v27 = vrot.slane %v69_v22, %v77_v23 }
  0x2d   :  { %125 = vmatprep.subr.mxu0 %v54_v13  ;;  %196 = vmatprep.subr.mxu1 %v56_v14  ;;  %v86_v28 = vrot.slane %v69_v22, %v85_v24  ;;  %p334_p5 = pnand %p333_p4, %p327_p1 }
  0x2e   :  { %126 = vmatpush1.msra.mxu0 %v53_v15  ;;  %197 = vmatpush1.msra.mxu1 %v55_v16 }
  0x2f   :  { %257 = vmatmul.mubr.msk.f32.vlgmr.msra.gmra.mxu0 %vm91_vm0, %v52_v17  ;;  %258 = vmatmul.mubr.msk.f32.vlgmr.msra.gmra.mxu1 %vm91_vm0, %v52_v17 }
  0xef   :  { %v161_v29 = vpop.f32.mrf.mxu0  ;;  %v232_v30 = vpop.f32.mrf.mxu1 }
  0xf0   :  { %v162_v31 = vadd.f32 %v161_v29, %v74_v25  ;;  %v233_v32 = vadd.f32 %v232_v30, %v82_v26 }
  0xf1   :  { %v163_v33 = vpop.f32.mrf.mxu0  ;;  %v234_v34 = vpop.f32.mrf.mxu1 }
  0xf2   :  { %237 = vst [vmem:[#allocation8] sm:$0xff] %v162_v31  ;;  %239 = vst [vmem:[#allocation8 + $0x10] sm:$0xff] %v233_v32  ;;  %v164_v35 = vadd.f32 %v163_v33, %v78_v27  ;;  %v235_v36 = vadd.f32 %v234_v34, %v86_v28 }
  0xf4   :  { %238 = vst [vmem:[#allocation8 + $0x8] sm:$0xff] %v164_v35  ;;  %240 = vst [vmem:[#allocation8 + $0x18] sm:$0xff] %v235_v36 }
  0xf5   :  { %337 = shalt.err (!%p334_p5)
}
  0xf6   :  { %250 = dma.vmem_to_hbm [thread:$0]  %s248_s2, 512, %s394_s3, [#allocation4]  }
  0xf7   :  { %350 = dma.done.wait [#allocation4], 512  }
  0xf8   :  { %351 = vsyncadd [#allocation4], 4294966784 }
  0xf9   :  { %254 = vsyncpa [#allocation3], 1 }
  0xfa   :  { %255 = vsyncpa [#allocation6], 1 }
  0xfb   :  { %256 = vsyncpa [#allocation4], 1 }

</bundles_post_ra>
